<compile_context>
chip_gen: v6e
topology: v6e:2x2x1
jax: 0.10.0
libtpu: 0.0.40
codegen_flags: <defaults>
</compile_context>

<pallas_src>
import math
import functools

import jax
import jax.numpy as jnp
from jax.experimental import pallas as pl
from jax.experimental.pallas import tpu as pltpu


def _round_up(x, m):
    return ((x + m - 1) // m) * m


def _cc_kernel(emb1_ref, proj_ref, emb2_ref, out_ref, tmp_ref):
    """out[i, j] tile = (emb1[i] @ proj) @ emb2[j].T   (act = identity)."""
    # Cache tmp_i = emb1_tile @ proj across the inner (j over N2) grid axis so
    # the first matmul runs once per emb1 tile instead of once per output tile.
    @pl.when(pl.program_id(1) == 0)
    def _():
        tmp_ref[...] = jnp.dot(emb1_ref[...], proj_ref[...],
                               preferred_element_type=jnp.float32)

    # recon = tmp @ emb2.T, expressed as a contraction over the *last* dims so
    # the MXU consumes emb2 in its native [tn, D] layout (no XLU transpose).
    recon = jax.lax.dot_general(
        tmp_ref[...], emb2_ref[...],
        dimension_numbers=(((1,), (1,)), ((), ())),
        preferred_element_type=jnp.float32)
    out_ref[...] = recon.astype(out_ref.dtype)


@functools.partial(jax.jit, static_argnames=("tm", "tn"))
def cc_forward(emb1, emb2, proj, *, tm=128, tn=256):
    """Pallas implementation of CC.forward (act = identity)."""
    n1, d = emb1.shape
    n2, d2 = emb2.shape
    assert d == d2 == proj.shape[0] == proj.shape[1]

    # --- tile sizes ------------------------------------------------------
    # Output last dim (tn) lane-dense: multiple of 128 -> unmasked stores.
    # Output 2nd-to-last (tm) sublane-aligned: multiple of 8.
    # Clamp tiles to the (padded) problem so tiny inputs stay cheap.
    tm = min(tm, _round_up(n1, 8))
    tn = min(tn, _round_up(n2, 128))
    n1p = _round_up(n1, tm)
    n2p = _round_up(n2, tn)

    # Zero-pad N1/N2 so the grid tiles evenly; padded rows/cols are sliced off
    # at the end (zero rows/cols only contribute to slices we drop).
    if n1p != n1:
        emb1 = jnp.pad(emb1, ((0, n1p - n1), (0, 0)))
    if n2p != n2:
        emb2 = jnp.pad(emb2, ((0, n2p - n2), (0, 0)))

    grid = (n1p // tm, n2p // tn)  # i over N1 (outer), j over N2 (inner)

    flops = 2 * n1p * d * d + 2 * n1p * n2p * d
    bytes_accessed = 4 * (n1p * d + n2p * d + d * d + n1p * n2p)

    out = pl.pallas_call(
        _cc_kernel,
        out_shape=jax.ShapeDtypeStruct((n1p, n2p), jnp.float32),
        grid=grid,
        in_specs=[
            pl.BlockSpec((tm, d), lambda i, j: (i, 0)),   # emb1 tile (per i, reused over j)
            pl.BlockSpec((d, d), lambda i, j: (0, 0)),    # proj, resident in VMEM
            pl.BlockSpec((tn, d), lambda i, j: (j, 0)),   # emb2 tile (per j)
        ],
        out_specs=pl.BlockSpec((tm, tn), lambda i, j: (i, j)),
        scratch_shapes=[pltpu.VMEM((tm, d), jnp.float32)],  # cached emb1_tile @ proj
        compiler_params=pltpu.CompilerParams(
            # i over N1 can be sharded across TensorCores (v7x megacore);
            # j must stay sequential because tmp_ref is carried across it.
            dimension_semantics=("parallel", "arbitrary")),
        cost_estimate=pl.CostEstimate(
            flops=flops, transcendentals=0, bytes_accessed=bytes_accessed),
    )(emb1, proj, emb2)

    # act = identity (module default); slice padding off.
    return out[:n1, :n2]


def xavier_uniform(key, shape, dtype=jnp.float32):
    fan_in, fan_out = shape[0], shape[1]
    bound = math.sqrt(6.0 / (fan_in + fan_out))
    return jax.random.uniform(key, shape, dtype, minval=-bound, maxval=bound)


if __name__ == "__main__":
    trans_dim = 32
    n1, n2 = 8, 16

    key = jax.random.PRNGKey(0)
    k_proj, k_e1, k_e2 = jax.random.split(key, 3)

    proj = xavier_uniform(k_proj, (trans_dim, trans_dim))
    emb1 = jax.random.normal(k_e1, (n1, trans_dim), jnp.float32)
    emb2 = jax.random.normal(k_e2, (n2, trans_dim), jnp.float32)

    out = cc_forward(emb1, emb2, proj)
    jax.block_until_ready(out)

    # sanity-check against pure-JAX reference
    ref = emb1 @ proj @ emb2.T
    assert out.shape == (n1, n2)
    assert jnp.allclose(out, ref, atol=1e-4, rtol=1e-4)

    print("KERNEL_OK")
</pallas_src>

<mosaic_0001>
module attributes {stable_mosaic.version = 11 : i64} {
  func.func @_cc_kernel(%arg0: i32, %arg1: i32, %arg2: memref<8x32xf32, #tpu.memory_space<vmem>>, %arg3: memref<32x32xf32, #tpu.memory_space<vmem>>, %arg4: memref<128x32xf32, #tpu.memory_space<vmem>>, %arg5: memref<8x128xf32, #tpu.memory_space<vmem>>, %arg6: memref<8x32xf32, #tpu.memory_space<vmem>>) attributes {dimension_semantics = [#tpu.dimension_semantics<parallel>, #tpu.dimension_semantics<arbitrary>], iteration_bounds = array<i64: 1, 1>, scalar_prefetch = 0 : i64, scratch_operands = 1 : i64, tpu.core_type = #tpu.core_type<tc>, window_params = [{transform_indices = @transform_0, window_bounds = array<i64: 8, 32>}, {pipeline_mode = #tpu.pipeline_mode<synchronous>, transform_indices = @transform_1, window_bounds = array<i64: 32, 32>}, {transform_indices = @transform_2, window_bounds = array<i64: 128, 32>}, {transform_indices = @transform_3, window_bounds = array<i64: 8, 128>}]} {
    %c0_i32 = arith.constant 0 : i32
    %0 = arith.cmpi eq, %arg1, %c0_i32 : i32
    %1 = arith.extui %0 : i1 to i32
    %c0_i32_0 = arith.constant 0 : i32
    %2 = arith.cmpi ne, %1, %c0_i32_0 : i32
    scf.if %2 {
      %c0_6 = arith.constant 0 : index
      %c0_7 = arith.constant 0 : index
      %7 = vector.load %arg2[%c0_6, %c0_7] : memref<8x32xf32, #tpu.memory_space<vmem>>, vector<8x32xf32>
      %c0_8 = arith.constant 0 : index
      %c0_9 = arith.constant 0 : index
      %8 = vector.load %arg3[%c0_8, %c0_9] : memref<32x32xf32, #tpu.memory_space<vmem>>, vector<32x32xf32>
      %cst_10 = arith.constant dense<0.000000e+00> : vector<8x32xf32>
      %9 = tpu.matmul %7, %8, %cst_10 {dimension_numbers = #tpu.dot_dimension_numbers<[1], [0], [0], [1], [0, 0, 1, 1], [], []>} : vector<8x32xf32>, vector<32x32xf32>, vector<8x32xf32> -> vector<8x32xf32>
      %c0_11 = arith.constant 0 : index
      %c0_12 = arith.constant 0 : index
      %10 = vector.load %arg6[%c0_11, %c0_12] : memref<8x32xf32, #tpu.memory_space<vmem>>, vector<8x32xf32>
      tpu.vector_store %arg6[%c0_11, %c0_12], %9 {strides = array<i32>} : memref<8x32xf32, #tpu.memory_space<vmem>>, vector<8x32xf32>,
    } else {
    }
    %c0 = arith.constant 0 : index
    %c0_1 = arith.constant 0 : index
    %3 = vector.load %arg6[%c0, %c0_1] : memref<8x32xf32, #tpu.memory_space<vmem>>, vector<8x32xf32>
    %c0_2 = arith.constant 0 : index
    %c0_3 = arith.constant 0 : index
    %4 = vector.load %arg4[%c0_2, %c0_3] : memref<128x32xf32, #tpu.memory_space<vmem>>, vector<128x32xf32>
    %cst = arith.constant dense<0.000000e+00> : vector<8x128xf32>
    %5 = tpu.matmul %3, %4, %cst {dimension_numbers = #tpu.dot_dimension_numbers<[1], [1], [0], [0], [0, 0, 1, 0], [], []>} : vector<8x32xf32>, vector<128x32xf32>, vector<8x128xf32> -> vector<8x128xf32>
    %c0_4 = arith.constant 0 : index
    %c0_5 = arith.constant 0 : index
    %6 = vector.load %arg5[%c0_4, %c0_5] : memref<8x128xf32, #tpu.memory_space<vmem>>, vector<8x128xf32>
    tpu.vector_store %arg5[%c0_4, %c0_5], %5 {strides = array<i32>} : memref<8x128xf32, #tpu.memory_space<vmem>>, vector<8x128xf32>,
    return
  }
  func.func @transform_0(%arg0: i32, %arg1: i32) -> (i32, i32) {
    %c0_i32 = arith.constant 0 : i32
    %c0_i32_0 = arith.constant 0 : i32
    return %arg0, %c0_i32 : i32, i32
  }
  func.func @transform_1(%arg0: i32, %arg1: i32) -> (i32, i32) {
    %c0_i32 = arith.constant 0 : i32
    %c0_i32_0 = arith.constant 0 : i32
    %c0_i32_1 = arith.constant 0 : i32
    return %c0_i32, %c0_i32_0 : i32, i32
  }
  func.func @transform_2(%arg0: i32, %arg1: i32) -> (i32, i32) {
    %c0_i32 = arith.constant 0 : i32
    %c0_i32_0 = arith.constant 0 : i32
    return %arg1, %c0_i32 : i32, i32
  }
  func.func @transform_3(%arg0: i32, %arg1: i32) -> (i32, i32) {
    %c0_i32 = arith.constant 0 : i32
    return %arg0, %arg1 : i32, i32
  }
}

</mosaic_0001>

<bundles_post_ra>
// kernel: cc_forward.1
= control target key start
LH: loop header
LB: loop body
LE: loop exit
PB: predicated region body
PF: predicated region fallthrough
CT: control target
= control target key end

     0   :  { %v364_v1 = vmov 0.0   ;;  %vm365_vm0 = vmmov 0   ;;  %vm24_vm1 = vcmask 261120   ;;  %s494_s0 = inlined_call_operand.vmem [shape: f32[8,32], index: 0, kind: input, shape index: {}]   ;;  %s495_s1 = inlined_call_operand.vmem [shape: f32[32,32], index: 1, kind: input, shape index: {}]   ;;  %s496_s2 = inlined_call_operand.vmem [shape: f32[128,32], index: 2, kind: input, shape index: {}]   ;;  %s497_s3 = inlined_call_operand.hbm [shape: f32[8,128], index: 3, kind: output, shape index: {}]  }
   0x1   :  { %v23_v0 = vld [vmem:[%s495_s1 + $0x18] sm:$0xff]  ;;  %293 = vmatprep.subr.mxu0 %v364_v1  ;;  %v22_v2 = vld [vmem:[%s495_s1 + $0x10] sm:$0xff]  ;;  %301 = vmatprep.mubr.msk.f32.mxu0 %vm365_vm0, %v364_v1  ;;  %v21_v4 = vld [vmem:[%s495_s1 + $0x8] sm:$0xff] }
   0x2   :  { %v115_v3 = vld [vmem:[%s496_s2 + $0x78] sm:$0xff]  ;;  %294 = vmatpush3.msra.mxu0 %v23_v0  ;;  %304 = vmatprep.subr.mxu1 %v364_v1  ;;  %v114_v5 = vld [vmem:[%s496_s2 + $0x70] sm:$0xff]  ;;  %v20_v6 = vld [vmem:[%s495_s1] sm:$0xff] }
   0x3   :  { %295 = vmatprep.subr.mxu0 %v364_v1  ;;  %305 = vmatpush3.xpose.msk.msra.mxu1 %vm24_vm1, %v115_v3  ;;  %v19_v7 = vld [vmem:[%s494_s0] sm:$0xff] }
   0x4   :  { %296 = vmatpush3.msra.mxu0 %v22_v2  ;;  %306 = vmatprep.subr.mxu1 %v364_v1 }
   0x5   :  { %297 = vmatprep.subr.mxu0 %v364_v1  ;;  %336 = vmatprep.mubr.msk.f32.mxu1 %vm365_vm0, %v364_v1 }
   0x6   :  { %298 = vmatpush3.msra.mxu0 %v21_v4 }
   0x7   :  { %8 = vsyncpa [#allocation4], 0  ;;  %299 = vmatprep.subr.mxu0 %v364_v1  ;;  %307 = vmatpush3.xpose.msk.msra.mxu1 %vm24_vm1, %v114_v5  ;;  %v113_v8 = vld [vmem:[%s496_s2 + $0x68] sm:$0xff]  ;;  %v112_v9 = vld [vmem:[%s496_s2 + $0x60] sm:$0xff]  ;;  %s366_s25 = smov [#allocation3]  }
   0x8   :  { %300 = vmatpush3.msra.mxu0 %v20_v6  ;;  %308 = vmatprep.subr.mxu1 %v364_v1  ;;  %v111_v10 = vld [vmem:[%s496_s2 + $0x58] sm:$0xff]  ;;  %v110_v11 = vld [vmem:[%s496_s2 + $0x50] sm:$0xff]  ;;  %v109_v12 = vld [vmem:[%s496_s2 + $0x48] sm:$0xff]  ;;  %s245_s26 = sshll.u32 %s366_s25, 4  ;;  %s246_s26 = int_to_ptr.vmem [resolvable:$true] %s245_s26 }
   0x9   :  { %302 = vmatmul.mubr.msk.f32.vlgmr.msra.gmra.mxu0 %vm24_vm1, %v19_v7  ;;  %v108_v13 = vld [vmem:[%s496_s2 + $0x40] sm:$0xff]  ;;  %v107_v14 = vld [vmem:[%s496_s2 + $0x38] sm:$0xff]  ;;  %v106_v15 = vld [vmem:[%s496_s2 + $0x30] sm:$0xff]  ;;  %s342_s27 = scalar_lea.vmem %s246_s26, 128  ;;  %p347_p1 = scmp.lt.s32.totalorder %s246_s26, %s246_s26 }
   0xa   :  { %v105_v16 = vld [vmem:[%s496_s2 + $0x28] sm:$0xff]  ;;  %v104_v17 = vld [vmem:[%s496_s2 + $0x20] sm:$0xff]  ;;  %v103_v18 = vld [vmem:[%s496_s2 + $0x18] sm:$0xff]  ;;  %p343_p0 = scmp.ne.s32.totalorder %s246_s26, %s342_s27  ;;  %p348_p2 = scmp.lt.s32.totalorder %s342_s27, %s342_s27 }
   0xb   :  { %309 = vmatpush3.xpose.msk.msra.mxu1 %vm24_vm1, %v113_v8  ;;  %v102_v19 = vld [vmem:[%s496_s2 + $0x10] sm:$0xff]  ;;  %v101_v20 = vld [vmem:[%s496_s2 + $0x8] sm:$0xff]  ;;  %v100_v21 = vld [vmem:[%s496_s2] sm:$0xff] }
   0xc   :  { %310 = vmatprep.subr.mxu1 %v364_v1  ;;  %p349_p3 = por %p348_p2, %p347_p1 }
   0xe   :  { %p350_p4 = pnand %p349_p3, %p343_p0 }
   0xf   :  { %311 = vmatpush3.xpose.msk.msra.mxu1 %vm24_vm1, %v112_v9 }
  0x10   :  { %312 = vmatprep.subr.mxu1 %v364_v1 }
  0x13   :  { %313 = vmatpush3.xpose.msk.msra.mxu1 %vm24_vm1, %v111_v10 }
  0x14   :  { %314 = vmatprep.subr.mxu1 %v364_v1 }
  0x17   :  { %315 = vmatpush3.xpose.msk.msra.mxu1 %vm24_vm1, %v110_v11 }
  0x18   :  { %316 = vmatprep.subr.mxu1 %v364_v1 }
  0x1b   :  { %317 = vmatpush3.xpose.msk.msra.mxu1 %vm24_vm1, %v109_v12 }
  0x1c   :  { %318 = vmatprep.subr.mxu1 %v364_v1 }
  0x1f   :  { %319 = vmatpush3.xpose.msk.msra.mxu1 %vm24_vm1, %v108_v13 }
  0x20   :  { %320 = vmatprep.subr.mxu1 %v364_v1 }
  0x23   :  { %321 = vmatpush3.xpose.msk.msra.mxu1 %vm24_vm1, %v107_v14 }
  0x24   :  { %322 = vmatprep.subr.mxu1 %v364_v1 }
  0x27   :  { %323 = vmatpush3.xpose.msk.msra.mxu1 %vm24_vm1, %v106_v15 }
  0x28   :  { %324 = vmatprep.subr.mxu1 %v364_v1 }
  0x2b   :  { %325 = vmatpush3.xpose.msk.msra.mxu1 %vm24_vm1, %v105_v16 }
  0x2c   :  { %326 = vmatprep.subr.mxu1 %v364_v1 }
  0x2f   :  { %327 = vmatpush3.xpose.msk.msra.mxu1 %vm24_vm1, %v104_v17 }
  0x30   :  { %328 = vmatprep.subr.mxu1 %v364_v1 }
  0x33   :  { %329 = vmatpush3.xpose.msk.msra.mxu1 %vm24_vm1, %v103_v18 }
  0x34   :  { %330 = vmatprep.subr.mxu1 %v364_v1 }
  0x37   :  { %331 = vmatpush3.xpose.msk.msra.mxu1 %vm24_vm1, %v102_v19 }
  0x38   :  { %332 = vmatprep.subr.mxu1 %v364_v1 }
  0x3b   :  { %333 = vmatpush3.xpose.msk.msra.mxu1 %vm24_vm1, %v101_v20 }
  0x3c   :  { %334 = vmatprep.subr.mxu1 %v364_v1 }
  0x3f   :  { %335 = vmatpush3.xpose.msk.msra.mxu1 %vm24_vm1, %v100_v21 }
  0xc9   :  { %v94_v22 = vpop.f32.mrf.mxu0 }
  0xca   :  { %98 = vst.msk [vmem:[#allocation2] sm:$0xff] %vm24_vm1, %v94_v22 }
  0xcb   :  { %v303_v23 = vpop.f32.mrf.mxu0 }
  0xd1   :  { %v99_v24 = vld [vmem:[#allocation2] sm:$0xff] }
  0xd2   :  { %337 = vmatmul.mubr.msk.f32.vlgmr.msra.gmra.mxu1 %vm24_vm1, %v99_v24 }
 0x192   :  { %v234_v25 = vpop.f32.mrf.mxu1 }
 0x193   :  { %238 = vst [vmem:[#allocation3] sm:$0xff] %v234_v25 }
 0x194   :  { %v338_v26 = vpop.f32.mrf.mxu1 }
 0x195   :  { %353 = shalt.err (!%p350_p4)
}
 0x196   :  { %248 = dma.vmem_to_hbm [thread:$0]  %s246_s26, 128, %s497_s3, [#allocation4]  }
 0x197   :  { %362 = dma.done.wait [#allocation4], 128  }
 0x198   :  { %363 = vsyncadd [#allocation4], 4294967168 }
 0x199   :  { %252 = vsyncpa [#allocation4], 1 }

</bundles_post_ra>
